<compile_context>
chip_gen: v7x
topology: tpu7x:2x2x1
jax: 0.10.0
libtpu: 0.0.40
codegen_flags: <defaults>
</compile_context>

<pallas_src>
import functools

import numpy as np
import jax
import jax.numpy as jnp
from jax.experimental import pallas as pl
from jax.experimental.pallas import tpu as pltpu

_LANE = 128             # lane width / time-block size
_MAX_ROW_BLOCK = 4096   # 128-sample rows per grid step (2 MiB f32 per buffer)


def _cdiv(a: int, b: int) -> int:
    return -(-a // b)


def _round_up(x: int, m: int) -> int:
    return (x + m - 1) // m * m


# ---------------------------------------------------------------------------
# Deterministic parameter construction. Replicates the original module's exact
# scipy call: scipy.signal.firwin(ntaps, fc, fs=fs, pass_zero=False)
# (single band [fc, Nyquist], Hamming window, scale=True at f=Nyquist).
# ---------------------------------------------------------------------------
def firwin_pass_zero_false(ntaps: int, fc: float, fs: float) -> np.ndarray:
    nyq = 0.5 * fs
    cutoff = fc / nyq
    alpha = 0.5 * (ntaps - 1)
    m = np.arange(ntaps) - alpha
    left, right = cutoff, 1.0                       # band [fc, nyquist]
    h = right * np.sinc(right * m) - left * np.sinc(left * m)
    h *= np.hamming(ntaps)                          # scipy's default window
    c = np.cos(np.pi * m * 1.0)                     # scale frequency = Nyquist
    h /= np.sum(h * c)
    return h.astype(np.float32)


# ---------------------------------------------------------------------------
# Block-Toeplitz weight construction.
#   out[128j + i] = sum_k w[k] * xp[128j + i + k]   (xp = left-padded signal)
#   => out_block_j = x_block_j @ W0 + x_block_{j+1} @ W1
#   W0[p, i] = w[p - i]        for 0 <= p - i       <= ntaps-1
#   W1[q, i] = w[128 + q - i]  for 0 <= 128 + q - i <= ntaps-1
# ---------------------------------------------------------------------------
def build_block_toeplitz(taps: np.ndarray):
    ntaps = int(taps.shape[0])
    if ntaps > _LANE + 1:
        raise ValueError(f"ntaps={ntaps} > {_LANE + 1} unsupported by block-conv kernel.")
    w0 = np.zeros((_LANE, _LANE), np.float32)
    w1 = np.zeros((_LANE, _LANE), np.float32)
    for i in range(_LANE):            # output position inside a 128-sample block
        for k in range(ntaps):        # tap index
            p = i + k                 # position in the left-padded signal
            if p < _LANE:
                w0[p, i] = taps[k]
            else:
                w1[p - _LANE, i] = taps[k]
    return w0, w1


# ---------------------------------------------------------------------------
# Pallas kernel: one row tile of BOTH signals (input & target), on the MXU.
# ---------------------------------------------------------------------------
def _fir_pair_kernel(w0_ref, w1_ref, xi_ref, hi_ref, xt_ref, ht_ref, oi_ref, ot_ref):
    # w0_ref, w1_ref : (128, 128) Toeplitz taps, VMEM-resident across the grid
    # x*_ref         : (RB, 128)  current tile of flattened 128-sample rows
    # h*_ref         : (8, 128)   first rows of the next tile (only row 0 used)
    # o*_ref         : (RB, 128)  filtered rows
    w0 = w0_ref[...]
    w1 = w1_ref[...]

    def filt(x_ref, h_ref, o_ref):
        x0 = x_ref[...]
        rb = x0.shape[0]
        # xs[m] = X[global m + 1]: XLU sublane roll (no VMEM round trip) with a
        # one-row fix-up from the next tile's first row (halo).
        xs = pltpu.roll(x0, shift=rb - 1, axis=0)          # == jnp.roll(x0, -1, axis=0)
        is_last = jax.lax.broadcasted_iota(jnp.int32, (rb, _LANE), 0) == rb - 1
        halo = jnp.broadcast_to(h_ref[0:1, :], (rb, _LANE))
        xs = jnp.where(is_last, halo, xs)
        acc = jnp.dot(x0, w0, preferred_element_type=jnp.float32)
        acc = acc + jnp.dot(xs, w1, preferred_element_type=jnp.float32)
        o_ref[...] = acc.astype(o_ref.dtype)

    filt(xi_ref, hi_ref, oi_ref)
    filt(xt_ref, ht_ref, ot_ref)


# ---------------------------------------------------------------------------
# Wrapper: single fused pallas_call filtering both signals, (R, T) rows each.
# ---------------------------------------------------------------------------
def _fir_apply_pair(xin2d, xtg2d, w0, w1, pad: int):
    r, t = xin2d.shape
    nb = _cdiv(t, _LANE)        # real 128-sample blocks per row
    nbt = nb + 1                # +1 tail block per row -- see invariant in header
    assert nbt == nb + 1
    tp = nbt * _LANE
    m = r * nbt                 # total 128-sample rows per signal

    def layout(x2d):
        # Single pad pass: left "same" pad + right pad to the blocked length.
        # TODO(synk): could be removed entirely by fusing into the input DMA
        # (allow_input_fusion) or an in-kernel lane roll + boundary masks.
        xp = jnp.pad(x2d.astype(jnp.float32), ((0, 0), (pad, tp - pad - t)))
        return xp.reshape(m, _LANE)

    xi = layout(xin2d)
    xt = layout(xtg2d)

    # Rows per grid step: as large as VMEM comfortably allows, multiple of 8,
    # capped so the "parallel" grid keeps >= 2 steps (v7x megacore).
    rb = max(8, min(_MAX_ROW_BLOCK, _round_up(_cdiv(m, 2), 8)))
    g = _cdiv(m, rb)            # uneven last block handled by Pallas (no row pad)
    sub8 = rb // 8
    hb_last = _cdiv(m, 8) - 1   # last valid (8,128) halo block -> clamp target

    row_spec = pl.BlockSpec((rb, _LANE), lambda i: (i, 0))
    halo_spec = pl.BlockSpec(
        (8, _LANE), lambda i: (jnp.minimum((i + 1) * sub8, hb_last), 0))
    w_spec = pl.BlockSpec((_LANE, _LANE), lambda i: (0, 0))

    out_i, out_t = pl.pallas_call(
        _fir_pair_kernel,
        out_shape=(jax.ShapeDtypeStruct((m, _LANE), xin2d.dtype),
                   jax.ShapeDtypeStruct((m, _LANE), xtg2d.dtype)),
        grid=(g,),
        in_specs=[w_spec, w_spec, row_spec, halo_spec, row_spec, halo_spec],
        out_specs=(row_spec, row_spec),
        compiler_params=pltpu.CompilerParams(
            dimension_semantics=("parallel",),
            vmem_limit_bytes=48 * 1024 * 1024,
        ),
    )(w0, w1, xi, xi, xt, xt)

    # Restore (R, Tp) and drop the blocked-time padding.
    yi = out_i.reshape(r, tp)[:, :t]
    yt = out_t.reshape(r, tp)[:, :t]
    return yi, yt


@functools.partial(jax.jit, static_argnames=("pad",))
def fir_filter_pair(inp, tgt, w0, w1, *, pad: int):
    """Filter predicted and target signals (B, C, T) with the same FIR."""
    b, c, t = inp.shape
    yi, yt = _fir_apply_pair(inp.reshape(b * c, t), tgt.reshape(b * c, t), w0, w1, pad)
    return yi.reshape(b, c, t), yt.reshape(b, c, t)


class FIRFilter:
    """JAX/Pallas port of wavebeat.filter.FIRFilter (filter_type='lp')."""

    def __init__(self, filter_type="lp", fc=1000, fs=44100, ntaps=127, plot=False):
        if ntaps % 2 == 0:
            raise ValueError(f"ntaps must be odd (ntaps={ntaps}).")
        if filter_type != "lp":
            raise ValueError(f"unsupported filter_type={filter_type}")
        self.filter_type = filter_type
        self.fc = fc
        self.fs = fs
        self.ntaps = ntaps
        self.pad = ntaps // 2
        taps = firwin_pass_zero_false(ntaps, fc, fs)
        self.taps = jnp.asarray(taps)
        w0, w1 = build_block_toeplitz(taps)
        self.w0 = jnp.asarray(w0)
        self.w1 = jnp.asarray(w1)
        # TODO(synk): `plot` (matplotlib magnitude response) is display-only; omitted.

    def __call__(self, input, target):
        return fir_filter_pair(input, target, self.w0, self.w1, pad=self.pad)


# ---------------------------------------------------------------------------
# Pure-numpy reference (cross-correlation with zero padding, like F.conv1d)
# ---------------------------------------------------------------------------
def _np_reference(x: np.ndarray, w: np.ndarray) -> np.ndarray:
    B, C, T = x.shape
    pad = w.shape[0] // 2
    out = np.zeros_like(x)
    for b in range(B):
        for c in range(C):
            xp = np.pad(x[b, c], (pad, pad))
            out[b, c] = np.convolve(xp, w[::-1], mode="valid")  # cross-correlation
    return out


if __name__ == "__main__":
    key = jax.random.PRNGKey(0)
    k1, k2 = jax.random.split(key)

    # (batch, channels=1, samples); T deliberately not a multiple of 128
    B, C, T = 2, 1, 1000
    x_in = jax.random.normal(k1, (B, C, T), dtype=jnp.float32)
    x_tg = jax.random.normal(k2, (B, C, T), dtype=jnp.float32)

    fir = FIRFilter(filter_type="lp", fc=1000, fs=44100, ntaps=127)

    y_in, y_tg = fir(x_in, x_tg)
    y_in = jax.block_until_ready(y_in)
    y_tg = jax.block_until_ready(y_tg)

    # Correctness check against numpy reference (f32 MXU accumulation).
    w_np = np.asarray(fir.taps)
    ref_in = _np_reference(np.asarray(x_in), w_np)
    ref_tg = _np_reference(np.asarray(x_tg), w_np)
    np.testing.assert_allclose(np.asarray(y_in), ref_in, rtol=1e-3, atol=1e-4)
    np.testing.assert_allclose(np.asarray(y_tg), ref_tg, rtol=1e-3, atol=1e-4)

    assert y_in.shape == (B, C, T) and y_tg.shape == (B, C, T)
    print("KERNEL_OK")
</pallas_src>

<mosaic_0001>
module attributes {stable_mosaic.version = 11 : i64} {
  func.func @_fir_pair_kernel(%arg0: i32, %arg1: memref<128x128xf32, #tpu.memory_space<vmem>>, %arg2: memref<128x128xf32, #tpu.memory_space<vmem>>, %arg3: memref<16x128xf32, #tpu.memory_space<vmem>>, %arg4: memref<8x128xf32, #tpu.memory_space<vmem>>, %arg5: memref<16x128xf32, #tpu.memory_space<vmem>>, %arg6: memref<8x128xf32, #tpu.memory_space<vmem>>, %arg7: memref<16x128xf32, #tpu.memory_space<vmem>>, %arg8: memref<16x128xf32, #tpu.memory_space<vmem>>) attributes {dimension_semantics = [#tpu.dimension_semantics<parallel>], iteration_bounds = array<i64: 2>, scalar_prefetch = 0 : i64, scratch_operands = 0 : i64, tpu.core_type = #tpu.core_type<tc>, window_params = [{pipeline_mode = #tpu.pipeline_mode<synchronous>, transform_indices = @transform_0, window_bounds = array<i64: 128, 128>}, {pipeline_mode = #tpu.pipeline_mode<synchronous>, transform_indices = @transform_1, window_bounds = array<i64: 128, 128>}, {transform_indices = @transform_2, window_bounds = array<i64: 16, 128>}, {transform_indices = @transform_3, window_bounds = array<i64: 8, 128>}, {transform_indices = @transform_4, window_bounds = array<i64: 16, 128>}, {transform_indices = @transform_5, window_bounds = array<i64: 8, 128>}, {transform_indices = @transform_6, window_bounds = array<i64: 16, 128>}, {transform_indices = @transform_7, window_bounds = array<i64: 16, 128>}]} {
    %c0 = arith.constant 0 : index
    %c0_0 = arith.constant 0 : index
    %0 = vector.load %arg1[%c0, %c0_0] : memref<128x128xf32, #tpu.memory_space<vmem>>, vector<128x128xf32>
    %c0_1 = arith.constant 0 : index
    %c0_2 = arith.constant 0 : index
    %1 = vector.load %arg2[%c0_1, %c0_2] : memref<128x128xf32, #tpu.memory_space<vmem>>, vector<128x128xf32>
    %c0_3 = arith.constant 0 : index
    %c0_4 = arith.constant 0 : index
    %2 = vector.load %arg3[%c0_3, %c0_4] : memref<16x128xf32, #tpu.memory_space<vmem>>, vector<16x128xf32>
    %c15_i32 = arith.constant 15 : i32
    %3 = tpu.dynamic_rotate %2 by %c15_i32 dim 0 : vector<16x128xf32>, i32 -> vector<16x128xf32>
    %4 = tpu.iota {dimensions = array<i32: 0>} : vector<16x128xi32>
    %c15_i32_5 = arith.constant 15 : i32
    %5 = vector.broadcast %c15_i32_5 : i32 to vector<16x128xi32>
    %6 = arith.cmpi eq, %4, %5 : vector<16x128xi32>
    %c0_6 = arith.constant 0 : index
    %c0_7 = arith.constant 0 : index
    %7 = vector.load %arg4[%c0_6, %c0_7] : memref<8x128xf32, #tpu.memory_space<vmem>>, vector<1x128xf32>
    %8 = vector.shape_cast %7 : vector<1x128xf32> to vector<1x128xf32>
    %9 = vector.broadcast %8 : vector<1x128xf32> to vector<16x128xf32>
    %10 = arith.select %6, %9, %3 : vector<16x128xi1>, vector<16x128xf32>
    %cst = arith.constant dense<0.000000e+00> : vector<16x128xf32>
    %11 = tpu.matmul %2, %0, %cst {dimension_numbers = #tpu.dot_dimension_numbers<[1], [0], [0], [1], [0, 0, 1, 1], [], []>} : vector<16x128xf32>, vector<128x128xf32>, vector<16x128xf32> -> vector<16x128xf32>
    %cst_8 = arith.constant dense<0.000000e+00> : vector<16x128xf32>
    %12 = tpu.matmul %10, %1, %cst_8 {dimension_numbers = #tpu.dot_dimension_numbers<[1], [0], [0], [1], [0, 0, 1, 1], [], []>} : vector<16x128xf32>, vector<128x128xf32>, vector<16x128xf32> -> vector<16x128xf32>
    %13 = arith.addf %11, %12 : vector<16x128xf32>
    %c0_9 = arith.constant 0 : index
    %c0_10 = arith.constant 0 : index
    %14 = vector.load %arg7[%c0_9, %c0_10] : memref<16x128xf32, #tpu.memory_space<vmem>>, vector<16x128xf32>
    tpu.vector_store %arg7[%c0_9, %c0_10], %13 {strides = array<i32>} : memref<16x128xf32, #tpu.memory_space<vmem>>, vector<16x128xf32>,
    %c0_11 = arith.constant 0 : index
    %c0_12 = arith.constant 0 : index
    %15 = vector.load %arg5[%c0_11, %c0_12] : memref<16x128xf32, #tpu.memory_space<vmem>>, vector<16x128xf32>
    %c15_i32_13 = arith.constant 15 : i32
    %16 = tpu.dynamic_rotate %15 by %c15_i32_13 dim 0 : vector<16x128xf32>, i32 -> vector<16x128xf32>
    %17 = tpu.iota {dimensions = array<i32: 0>} : vector<16x128xi32>
    %c15_i32_14 = arith.constant 15 : i32
    %18 = vector.broadcast %c15_i32_14 : i32 to vector<16x128xi32>
    %19 = arith.cmpi eq, %17, %18 : vector<16x128xi32>
    %c0_15 = arith.constant 0 : index
    %c0_16 = arith.constant 0 : index
    %20 = vector.load %arg6[%c0_15, %c0_16] : memref<8x128xf32, #tpu.memory_space<vmem>>, vector<1x128xf32>
    %21 = vector.shape_cast %20 : vector<1x128xf32> to vector<1x128xf32>
    %22 = vector.broadcast %21 : vector<1x128xf32> to vector<16x128xf32>
    %23 = arith.select %19, %22, %16 : vector<16x128xi1>, vector<16x128xf32>
    %cst_17 = arith.constant dense<0.000000e+00> : vector<16x128xf32>
    %24 = tpu.matmul %15, %0, %cst_17 {dimension_numbers = #tpu.dot_dimension_numbers<[1], [0], [0], [1], [0, 0, 1, 1], [], []>} : vector<16x128xf32>, vector<128x128xf32>, vector<16x128xf32> -> vector<16x128xf32>
    %cst_18 = arith.constant dense<0.000000e+00> : vector<16x128xf32>
    %25 = tpu.matmul %23, %1, %cst_18 {dimension_numbers = #tpu.dot_dimension_numbers<[1], [0], [0], [1], [0, 0, 1, 1], [], []>} : vector<16x128xf32>, vector<128x128xf32>, vector<16x128xf32> -> vector<16x128xf32>
    %26 = arith.addf %24, %25 : vector<16x128xf32>
    %c0_19 = arith.constant 0 : index
    %c0_20 = arith.constant 0 : index
    %27 = vector.load %arg8[%c0_19, %c0_20] : memref<16x128xf32, #tpu.memory_space<vmem>>, vector<16x128xf32>
    tpu.vector_store %arg8[%c0_19, %c0_20], %26 {strides = array<i32>} : memref<16x128xf32, #tpu.memory_space<vmem>>, vector<16x128xf32>,
    return
  }
  func.func @transform_0(%arg0: i32) -> (i32, i32) {
    %c0_i32 = arith.constant 0 : i32
    %c0_i32_0 = arith.constant 0 : i32
    %c0_i32_1 = arith.constant 0 : i32
    return %c0_i32, %c0_i32_0 : i32, i32
  }
  func.func @transform_1(%arg0: i32) -> (i32, i32) {
    %c0_i32 = arith.constant 0 : i32
    %c0_i32_0 = arith.constant 0 : i32
    %c0_i32_1 = arith.constant 0 : i32
    return %c0_i32, %c0_i32_0 : i32, i32
  }
  func.func @transform_2(%arg0: i32) -> (i32, i32) {
    %c0_i32 = arith.constant 0 : i32
    %c0_i32_0 = arith.constant 0 : i32
    return %arg0, %c0_i32 : i32, i32
  }
  func.func @transform_3(%arg0: i32) -> (i32, i32) {
    %c1_i32 = arith.constant 1 : i32
    %0 = arith.addi %arg0, %c1_i32 : i32
    %c2_i32 = arith.constant 2 : i32
    %1 = arith.muli %0, %c2_i32 : i32
    %c2_i32_0 = arith.constant 2 : i32
    %2 = arith.minsi %1, %c2_i32_0 : i32
    %c0_i32 = arith.constant 0 : i32
    %c0_i32_1 = arith.constant 0 : i32
    return %2, %c0_i32 : i32, i32
  }
  func.func @transform_4(%arg0: i32) -> (i32, i32) {
    %c0_i32 = arith.constant 0 : i32
    %c0_i32_0 = arith.constant 0 : i32
    return %arg0, %c0_i32 : i32, i32
  }
  func.func @transform_5(%arg0: i32) -> (i32, i32) {
    %c1_i32 = arith.constant 1 : i32
    %0 = arith.addi %arg0, %c1_i32 : i32
    %c2_i32 = arith.constant 2 : i32
    %1 = arith.muli %0, %c2_i32 : i32
    %c2_i32_0 = arith.constant 2 : i32
    %2 = arith.minsi %1, %c2_i32_0 : i32
    %c0_i32 = arith.constant 0 : i32
    %c0_i32_1 = arith.constant 0 : i32
    return %2, %c0_i32 : i32, i32
  }
  func.func @transform_6(%arg0: i32) -> (i32, i32) {
    %c0_i32 = arith.constant 0 : i32
    %c0_i32_0 = arith.constant 0 : i32
    return %arg0, %c0_i32 : i32, i32
  }
  func.func @transform_7(%arg0: i32) -> (i32, i32) {
    %c0_i32 = arith.constant 0 : i32
    %c0_i32_0 = arith.constant 0 : i32
    return %arg0, %c0_i32 : i32, i32
  }
}

</mosaic_0001>

<bundles_post_ra>
// kernel: fir_filter_pair.1
= control target key start
LH: loop header
LB: loop body
LE: loop exit
PB: predicated region body
PF: predicated region fallthrough
CT: control target
= control target key end

     0   :  { %13 = vsyncpa [#allocation3], 0  ;;  %s2104_s24 = smov 0   ;;  %s2106_s25 = smov 0   ;;  %s2351_s0 = inlined_call_operand.vmem [shape: f32[128,128], index: 0, kind: input, shape index: {}]   ;;  %s2352_s1 = inlined_call_operand.hbm [shape: f32[128,128], index: 1, kind: input, shape index: {}]   ;;  %s2353_s2 = inlined_call_operand.vmem [shape: f32[18,128], index: 2, kind: input, shape index: {}, may-alias: {2,3}]   ;;  %s2354_s3 = inlined_call_operand.vmem [shape: f32[18,128], index: 3, kind: input, shape index: {}, may-alias: {2,3}]   ;;  %s2355_s4 = inlined_call_operand.vmem [shape: f32[18,128], index: 4, kind: input, shape index: {}, may-alias: {4,5}]   ;;  %s2356_s5 = inlined_call_operand.vmem [shape: f32[18,128], index: 5, kind: input, shape index: {}, may-alias: {4,5}]   ;;  %s2357_s6 = inlined_call_operand.vmem [shape: f32[18,128], index: 6, kind: output, shape index: {0}]   ;;  %s2358_s7 = inlined_call_operand.vmem [shape: f32[18,128], index: 7, kind: output, shape index: {1}]  }
   0x1   :  { %s2108_s26 = smov 0  }
   0x2 LB: > { %s2117_s27 = sadd.s32 4294967295, %s1995_s26   ;;  %s2119_s28 = sadd.s32 1, %s1995_s26   ;;  %s1995_s26 = sphi %s2108_s26, %s2372_s26   ;;  %s1991_s25 = sphi %s2106_s25, %s2371_s25   ;;  %s1987_s24 = sphi %s2104_s24, %s2370_s24  }
   0x3   : > { %s185_s29 = ssub.s32 %s1995_s26, %s2119_s28  ;;  %s188_s30 = sadd.s32 1, %s1991_s25 }
   0x4   : > { %p186_p0 = scmp.eq.s32.totalorder %s185_s29, 0  ;;  %p198_p1 = scmp.ne.s32.totalorder %s1991_s25, %s1987_s24 }
   0x5   : > { %p199_p2 = scmp.eq.s32.totalorder %s2117_s27, 1  ;;  %p1295_p3 = scmp.ge.s32.totalorder %s1995_s26, 1 }
   0x6   : > { %s2127_s8 = scalar_select %p186_p0, %s1991_s25, %s188_s30  }
   0x7   : > { %p2129_p4 = por %p199_p2, %p198_p1  ;;  %p238_p5 = scmp.lt.s32.totalorder %s1995_s26, 3 }
   0x8   : > { %p2359_p6 = scmp.eq.s32.totalorder %s2117_s27, 0  ;;  %s2061_s11 = smov [#allocation2]  }
   0x9   : > { %s2361_s9 = scalar_select %p2129_p4, 1, 0 }
   0xa   : > { %p2134_p7 = pnand %p1295_p3, %p238_p5  ;;  %s253_s12 = sshll.u32 %s2061_s11, 4  ;;  %s254_s12 = int_to_ptr.vmem [resolvable:$true] %s253_s12 }
   0xb   : > { %s1877_s16 = scalar_lea.hbm %s2352_s1, 2048 }
   0xc   : > { %s2362_s10 = scalar_select %p2134_p7, 1, 0 }
   0xd   : > { %p1716_p8 = pneg %p2134_p7  ;;  %p1878_p10 = scmp.ne.s32.totalorder %s2352_s1, %s1877_s16 }
   0xe   : > { %p1884_p0 = scmp.lt.u32.totalorder %s1877_s16, %s2352_s1 }
   0xf   : > { %p2142_p9 = pnand %p2359_p6, %p1716_p8 }
  0x11   : > { %p1879_p11 = pneg %p2142_p9 }
  0x13   : > { %p1880_p12 = pnand %p1879_p11, %p1878_p10 }
  0x15   : > { %p1881_p13 = pneg %p1880_p12 }
  0x17   : > { %p1886_p1 = pnand %p1884_p0, %p1881_p13 }
  0x19   : > { %1889 = shalt.err (!%p1886_p1)
}
  0x1a   : > { %s1890_s21 = scalar_lea.vmem %s254_s12, 2048  ;;  %p1898_p8 = scmp.lt.s32.totalorder %s254_s12, %s254_s12 }
  0x1b   : > { %p1891_p2 = scmp.ne.s32.totalorder %s254_s12, %s1890_s21  ;;  %p1899_p6 = scmp.lt.s32.totalorder %s1890_s21, %s1890_s21 }
  0x1d   : > { %p1893_p3 = pnand %p1891_p2, %p1879_p11  ;;  %p1900_p4 = por %p1899_p6, %p1898_p8 }
  0x1f   : > { %p1894_p5 = pneg %p1893_p3 }
  0x21   : > { %p1901_p7 = pnand %p1900_p4, %p1894_p5 }
  0x23   : > { %1904 = shalt.err (!%p1901_p7)
}
  0x24   : > { %s2062_s22 = smov 128   ;;  %s2063_s23 = smov 8  }
  0x25   : > { %1719 = dma.hbm_to_vmem [thread:$0]  (!%p2142_p9), %s2352_s1, 2048, %s254_s12, [#allocation3], %s2062_s22, %s2062_s22, %s2063_s23  }
  0x26   : > { %p2364_p10 = scmp.ne.s32.totalorder %s2362_s10, 0 }
  0x27   : > { %p2365_p12 = scmp.eq.s32.totalorder (!%p2364_p10), %s2117_s27, 0 }
  0x28   : > { %333 = sbr.rel (%p2364_p10) target bundleno = 437 (0x1b5), region = 44 }
  0x2f   : > { %1982 = dma.done.wait (%p2365_p12), [#allocation3], 2048   ;;  %p2366_p11 = pmov %p2365_p12 }
  0x30   : > { %s2169_s30 = sshll.u32 %s2117_s27, 1  ;;  %v495_v0 = vlaneseq  ;;  %v475_v1 = vld [vmem:[#allocation2] sm:$0xff]  ;;  %v476_v2 = vld [vmem:[#allocation2 + $0x8] sm:$0xff]  ;;  %v477_v3 = vld [vmem:[#allocation2 + $0x10] sm:$0xff]  ;;  %p2368_p7 = scmp.ne.s32.totalorder %s2361_s9, 0 }
  0x31   : > { %1984 = vsyncadd (%p2366_p11), [#allocation3], 4294965248  ;;  %p402_p4 = scmp.lt.s32.totalorder %s2169_s30, 2  ;;  %v1580_v4 = vpack.c.bf16 %v476_v2, %v475_v1  ;;  %v478_v5 = vld [vmem:[#allocation2 + $0x18] sm:$0xff]  ;;  %v479_v8 = vld [vmem:[#allocation2 + $0x20] sm:$0xff]  ;;  %s1359_s18 = sadd.s32 2, %s2169_s30 }
  0x32   : > { %v2173_v6 = vshrl.u32 %v495_v0, 7  ;;  %v1584_v7 = vpack.c.bf16 %v478_v5, %v477_v3  ;;  %v480_v9 = vld [vmem:[#allocation2 + $0x28] sm:$0xff]  ;;  %v481_v13 = vld [vmem:[#allocation2 + $0x30] sm:$0xff]  ;;  %v482_v14 = vld [vmem:[#allocation2 + $0x38] sm:$0xff]  ;;  %p2199_p6 = scmp.lt.s32.totalorder %s1359_s18, 2  ;;  %s1362_s15 = sshll.u32 (%p2368_p7), %s2117_s27, 4 }
  0x33   : > { %s403_s11 = scalar_select %p402_p4, %s2169_s30, 2  ;;  %1581 = vmatprep.subr.bf16.mxu0 %v1580_v4  ;;  %1645 = vmatprep.subr.bf16.mxu1 %v1580_v4  ;;  %v1588_v10 = vpack.c.bf16 %v480_v9, %v479_v8  ;;  %v1592_v22 = vpack.c.bf16 %v482_v14, %v481_v13  ;;  %v483_v23 = vld [vmem:[#allocation2 + $0x40] sm:$0xff]  ;;  %v484_v24 = vld [vmem:[#allocation2 + $0x48] sm:$0xff]  ;;  %v485_v27 = vld [vmem:[#allocation2 + $0x50] sm:$0xff] }
  0x34   : > { %1583 = vmatpush3.bf16.msra.mxu0 %v1580_v4  ;;  %1647 = vmatpush3.bf16.msra.mxu1 %v1580_v4  ;;  %vm497_vm0 = vcmp.lt.s32.totalorder %v2173_v6, 7  ;;  %v1596_v26 = vpack.c.bf16 %v484_v24, %v483_v23  ;;  %v486_v28 = vld [vmem:[#allocation2 + $0x58] sm:$0xff]  ;;  %s2374_s18 = smov (!%p2199_p6, %s1359_s18), 2  ;;  %v487_v30 = vld [vmem:[#allocation2 + $0x60] sm:$0xff]  ;;  %v488_v31 = vld [vmem:[#allocation2 + $0x68] sm:$0xff]  ;;  %v500_v36 = vadd.s32 8, %v2173_v6 }
  0x35   : > { %s1303_s13 = sshll.u32 %s403_s11, 3  ;;  %1585 = vmatprep.subr.bf16.mxu0 %v1584_v7  ;;  %1649 = vmatprep.subr.bf16.mxu1 %v1584_v7  ;;  %v1600_v29 = vpack.c.bf16 %v486_v28, %v485_v27  ;;  %s2376_s18 = smov (!%p2199_p6, %s2374_s18), 2  ;;  %v1604_v32 = vpack.c.bf16 %v488_v31, %v487_v30  ;;  %v489_v33 = vld [vmem:[#allocation2 + $0x70] sm:$0xff]  ;;  %v490_v34 = vld [vmem:[#allocation2 + $0x78] sm:$0xff]  ;;  %v459_v37 = vld [vmem:[%s2351_s0] sm:$0xff] }
  0x36   : > { %s405_s14 = scalar_lea.vmem %s2353_s2, %s1303_s13  ;;  %s431_s17 = scalar_lea.vmem %s2355_s4, %s1303_s13  ;;  %v1608_v35 = vpack.c.bf16 %v490_v34, %v489_v33  ;;  %v460_v38 = vld [vmem:[%s2351_s0 + $0x8] sm:$0xff]  ;;  %vm502_vm1 = vcmp.eq.s32.totalorder %v500_v36, 15  ;;  %v461_v44 = vld [vmem:[%s2351_s0 + $0x10] sm:$0xff]  ;;  %v462_v45 = vld [vmem:[%s2351_s0 + $0x18] sm:$0xff] }
  0x37   : > { %v2181_v11 = vld [vmem:[%s405_s14] sm:$0xff]  ;;  %v2183_v12 = vld [vmem:[%s405_s14 + $0x8] sm:$0xff]  ;;  %s1308_s20 = sshll.u32 %s2376_s18, 3  ;;  %v1612_v39 = vpack.c.bf16 %v460_v38, %v459_v37  ;;  %v1616_v48 = vpack.c.bf16 %v462_v45, %v461_v44  ;;  %v465_v52 = vld [vmem:[%s2351_s0 + $0x30] sm:$0xff]  ;;  %s2286_s18 = scalar_lea.vmem (%p2368_p7), %s2357_s6, %s1362_s15  }
  0x38   : > { %v493_v15 = vrot.slane %v2181_v11, 1  ;;  %v494_v16 = vrot.slane %v2183_v12, 1  ;;  %v2188_v17 = vld [vmem:[%s431_s17] sm:$0xff]  ;;  %v2190_v18 = vld [vmem:[%s431_s17 + $0x8] sm:$0xff]  ;;  %1587 = vmatpush3.bf16.msra.mxu0 %v1584_v7  ;;  %1651 = vmatpush3.bf16.msra.mxu1 %v1584_v7  ;;  %s418_s13 = scalar_lea.vmem %s2354_s3, %s1308_s20  ;;  %s444_s14 = scalar_lea.vmem %s2356_s5, %s1308_s20  ;;  %v466_v53 = vld [vmem:[%s2351_s0 + $0x38] sm:$0xff] }
  0x39   : > { %v664_v19 = vrot.slane %v2188_v17, 1  ;;  %v665_v21 = vrot.slane %v2190_v18, 1  ;;  %1589 = vmatprep.subr.bf16.mxu0 %v1588_v10  ;;  %1653 = vmatprep.subr.bf16.mxu1 %v1588_v10  ;;  %v1316_v41 = vld [vmem:[%s418_s13] ss:$0 sm:$0xff]  ;;  %v464_v50 = vld [vmem:[%s2351_s0 + $0x28] sm:$0xff]  ;;  %v1624_v54 = vpack.c.bf16 %v466_v53, %v465_v52  ;;  %v469_v58 = vld [vmem:[%s2351_s0 + $0x50] sm:$0xff] }
  0x3a   : > { %v498_v20 = vsel %vm497_vm0, %v493_v15, %v494_v16  ;;  %v499_v40 = vsel %vm497_vm0, %v494_v16, %v493_v15  ;;  %v1317_v43 = vld [vmem:[%s444_s14] ss:$0 sm:$0xff]  ;;  %v468_v56 = vld [vmem:[%s2351_s0 + $0x48] sm:$0xff]  ;;  %v470_v59 = vld [vmem:[%s2351_s0 + $0x58] sm:$0xff]  ;;  %s388_s13 = sand.u32 1, %s1987_s24   ;;  %s839_s24 = ssub.s32 (%p2368_p7), 3, %s2169_s30 }
  0x3b   : > { %1472 = vmatprep.mubr.f32.mxu0 %v498_v20  ;;  %v666_v25 = vsel %vm497_vm0, %v664_v19, %v665_v21  ;;  %v667_v42 = vsel %vm497_vm0, %v665_v21, %v664_v19  ;;  %v509_v46 = vsel %vm502_vm1, %v1316_v41, %v499_v40  ;;  %v463_v49 = vld [vmem:[%s2351_s0 + $0x20] sm:$0xff]  ;;  %v1632_v60 = vpack.c.bf16 %v470_v59, %v469_v58  ;;  %v472_v62 = vld [vmem:[%s2351_s0 + $0x68] sm:$0xff]  ;;  %v473_v0 = vld [vmem:[%s2351_s0 + $0x70] sm:$0xff]  ;;  %s1300_s10 = sshll.u32 %s388_s13, 4  ;;  %p840_p9 = scmp.lt.s32.totalorder (%p2368_p7), %s839_s24, 2 }
  0x3c   : > { %1542 = vmatprep.mubr.f32.mxu1 %v666_v25  ;;  %1591 = vmatpush3.bf16.msra.mxu0 %v1588_v10  ;;  %v674_v47 = vsel %vm502_vm1, %v1317_v43, %v667_v42  ;;  %v1620_v51 = vpack.c.bf16 %v464_v50, %v463_v49  ;;  %v467_v55 = vld [vmem:[%s2351_s0 + $0x40] sm:$0xff]  ;;  %v474_v1 = vld [vmem:[%s2351_s0 + $0x78] sm:$0xff]  ;;  %s2271_s12 = scalar_lea.vmem [#allocation4], %s1300_s10   ;;  %s2274_s14 = scalar_lea.vmem [#allocation5], %s1300_s10  }
  0x3d   : > { %1655 = vmatpush3.bf16.msra.mxu1 %v1588_v10  ;;  %1593 = vmatprep.subr.bf16.mxu0 %v1592_v22  ;;  %v1628_v57 = vpack.c.bf16 %v468_v56, %v467_v55  ;;  %v471_v61 = vld [vmem:[%s2351_s0 + $0x60] sm:$0xff]  ;;  %v1640_v2 = vpack.c.bf16 %v474_v1, %v473_v0 }
  0x3e   : > { %1657 = vmatprep.subr.bf16.mxu1 %v1592_v22  ;;  %v1636_v63 = vpack.c.bf16 %v472_v62, %v471_v61 }
  0x40   : > { %1595 = vmatpush3.bf16.msra.mxu0 %v1592_v22 }
  0x41   : > { %1659 = vmatpush3.bf16.msra.mxu1 %v1592_v22  ;;  %1597 = vmatprep.subr.bf16.mxu0 %v1596_v26 }
  0x42   : > { %1661 = vmatprep.subr.bf16.mxu1 %v1596_v26 }
  0x44   : > { %1599 = vmatpush3.bf16.msra.mxu0 %v1596_v26 }
  0x45   : > { %1663 = vmatpush3.bf16.msra.mxu1 %v1596_v26  ;;  %1601 = vmatprep.subr.bf16.mxu0 %v1600_v29 }
  0x46   : > { %1665 = vmatprep.subr.bf16.mxu1 %v1600_v29 }
  0x48   : > { %1603 = vmatpush3.bf16.msra.mxu0 %v1600_v29 }
  0x49   : > { %1667 = vmatpush3.bf16.msra.mxu1 %v1600_v29  ;;  %1605 = vmatprep.subr.bf16.mxu0 %v1604_v32 }
  0x4a   : > { %1669 = vmatprep.subr.bf16.mxu1 %v1604_v32 }
  0x4c   : > { %1607 = vmatpush3.bf16.msra.mxu0 %v1604_v32 }
  0x4d   : > { %1671 = vmatpush3.bf16.msra.mxu1 %v1604_v32  ;;  %1609 = vmatprep.subr.bf16.mxu0 %v1608_v35 }
  0x4e   : > { %1673 = vmatprep.subr.bf16.mxu1 %v1608_v35 }
  0x50   : > { %1611 = vmatpush3.bf16.msra.mxu0 %v1608_v35 }
  0x51   : > { %1675 = vmatpush3.bf16.msra.mxu1 %v1608_v35  ;;  %1613 = vmatprep.subr.bf16.mxu0 %v1612_v39 }
  0x52   : > { %1677 = vmatprep.subr.bf16.mxu1 %v1612_v39 }
  0x53   : > { %1473 = vmatmul.mubr.f32.vlgmr.msra.gmra.mrb[0].mxu0 %v509_v46 }
  0x54   : > { %1543 = vmatmul.mubr.f32.vlgmr.msra.gmra.mrb[0].mxu1 %v674_v47  ;;  %1615 = vmatpush3.bf16.msra.mxu0 %v1612_v39 }
  0x55   : > { %1679 = vmatpush3.bf16.msra.mxu1 %v1612_v39  ;;  %1617 = vmatprep.subr.bf16.mxu0 %v1616_v48 }
  0x56   : > { %1681 = vmatprep.subr.bf16.mxu1 %v1616_v48  ;;  %1507 = vmatprep.mubr.f32.mxu0 %v2181_v11 }
  0x57   : > { %1577 = vmatprep.mubr.f32.mxu1 %v2188_v17 }
  0x58   : > { %1619 = vmatpush3.bf16.msra.mxu0 %v1616_v48 }
  0x59   : > { %1683 = vmatpush3.bf16.msra.mxu1 %v1616_v48  ;;  %1621 = vmatprep.subr.bf16.mxu0 %v1620_v51 }
  0x5a   : > { %1685 = vmatprep.subr.bf16.mxu1 %v1620_v51 }
  0x5c   : > { %1623 = vmatpush3.bf16.msra.mxu0 %v1620_v51 }
  0x5d   : > { %1687 = vmatpush3.bf16.msra.mxu1 %v1620_v51  ;;  %1625 = vmatprep.subr.bf16.mxu0 %v1624_v54 }
  0x5e   : > { %1689 = vmatprep.subr.bf16.mxu1 %v1624_v54 }
  0x60   : > { %1627 = vmatpush3.bf16.msra.mxu0 %v1624_v54 }
  0x61   : > { %1691 = vmatpush3.bf16.msra.mxu1 %v1624_v54  ;;  %1629 = vmatprep.subr.bf16.mxu0 %v1628_v57 }
  0x62   : > { %1693 = vmatprep.subr.bf16.mxu1 %v1628_v57 }
  0x64   : > { %1631 = vmatpush3.bf16.msra.mxu0 %v1628_v57 }
  0x65   : > { %1695 = vmatpush3.bf16.msra.mxu1 %v1628_v57  ;;  %1633 = vmatprep.subr.bf16.mxu0 %v1632_v60 }
  0x66   : > { %1697 = vmatprep.subr.bf16.mxu1 %v1632_v60 }
  0x68   : > { %1635 = vmatpush3.bf16.msra.mxu0 %v1632_v60 }
  0x69   : > { %1699 = vmatpush3.bf16.msra.mxu1 %v1632_v60  ;;  %1637 = vmatprep.subr.bf16.mxu0 %v1636_v63 }
  0x6a   : > { %1701 = vmatprep.subr.bf16.mxu1 %v1636_v63 }
  0x6c   : > { %1639 = vmatpush3.bf16.msra.mxu0 %v1636_v63 }
  0x6d   : > { %1703 = vmatpush3.bf16.msra.mxu1 %v1636_v63  ;;  %1641 = vmatprep.subr.bf16.mxu0 %v1640_v2 }
  0x6e   : > { %1705 = vmatprep.subr.bf16.mxu1 %v1640_v2 }
  0x70   : > { %1643 = vmatpush3.bf16.msra.mxu0 %v1640_v2 }
  0x71   : > { %1707 = vmatpush3.bf16.msra.mxu1 %v1640_v2 }
  0x73   : > { %1508 = vmatmul.mubr.f32.vlgmr.msra.gmra.mrb[0].mxu0 %v2183_v12 }
  0x74   : > { %1578 = vmatmul.mubr.f32.vlgmr.msra.gmra.mrb[0].mxu1 %v2190_v18 }
 0x143   : > { %837 = sbr.rel (!%p2368_p7) target bundleno = 379 (0x17b), region = 52 }
 0x146   : > { %v1509_v3 = vpop.f32.mrb[0].mxu0 }
 0x147   : > { %v1579_v4 = vpop.f32.mrb[0].mxu1  ;;  %661 = vst [vmem:[%s2271_s12 + $0x8] sm:$0xff] %v1509_v3  ;;  %v651_v5 = vpop.f32.mrb[1].mxu0 }
 0x148   : > { %826 = vst [vmem:[%s2274_s14 + $0x8] sm:$0xff] %v1579_v4  ;;  %v816_v6 = vpop.f32.mrb[1].mxu1  ;;  %660 = vst [vmem:[%s2271_s12] sm:$0xff] %v651_v5 }
 0x149   : > { %825 = vst [vmem:[%s2274_s14] sm:$0xff] %v816_v6 }
 0x14a   : > { %s2378_s24 = smov (!%p840_p9, %s839_s24), 2 }
 0x14b   : > { %s1321_s19 = sshll.u32 %s2378_s24, 7 }
 0x14c   : > { %p1324_p13 = scmp.eq.s32.totalorder %s1321_s19, 0 }
 0x14d   : > { %s2292_s20 = sshrl.u32 (!%p1324_p13), %s2378_s24, 1 }
 0x14e   : > { %848 = sbr.rel (%p1324_p13) target bundleno = 379 (0x17b), region = 56  ;;  %p1325_p0 = scmp.le.s32.totalorder (!%p1324_p13), %s2292_s20, 0 }
 0x155   : > { %1182 = sbr.rel (%p1325_p0) target bundleno = 358 (0x166), region = 214  ;;  %s1997_s21 = smov (!%p1325_p0), %s2286_s18  }
 0x156   : > { %s2001_s22 = smov (!%p1325_p0), %s2271_s12   ;;  %s2005_s23 = smov (!%p1325_p0), 0  }
 0x157   : > { %s2009_s26 = smov (!%p1325_p0), 0  }
 0x15c LB: >> { %v912_v7 = vld [vmem:[%s2003_s22] sm:$0xff]  ;;  %v914_v8 = vld [vmem:[%s2003_s22 + $0x8] sm:$0xff]  ;;  %s916_s29 = sadd.s32 1, %s2007_s23  ;;  %s906_s26 = sadd.s32 1, %s2011_s26   ;;  %s2011_s26 = sphi %s2009_s26, %s906_s26   ;;  %s2007_s23 = sphi %s2005_s23, %s2006_s23   ;;  %s2003_s22 = sphi %s2001_s22, %s921_s22   ;;  %s1999_s21 = sphi %s1997_s21, %s922_s21  }
 0x15d   : >> { %913 = vst [vmem:[%s1999_s21] sm:$0xff] %v912_v7  ;;  %915 = vst [vmem:[%s1999_s21 + $0x8] sm:$0xff] %v914_v8  ;;  %p917_p1 = scmp.ge.s32.totalorder %s916_s29, %s2292_s20  ;;  %p905_p2 = scmp.ge.s32.totalorder %s906_s26, %s2292_s20 }
 0x15f   : >> { %s2380_s29 = smov (%p917_p1, %s916_s29), 0  ;;  %908 = sbr.rel (!%p905_p2) target bundleno = 348 (0x15c), region = 220 }
 0x160   : >> { %s1326_s11 = sshll.u32 %s2380_s29, 4  ;;  %s2006_s23 = smov %s2380_s29  }
 0x161   : >> { %s921_s22 = scalar_lea.vmem %s2271_s12, %s1326_s11 [#allocation4]   ;;  %s922_s21 = scalar_lea.vmem %s2286_s18, %s1326_s11  }
 0x166 PF: > { %s2302_s13 = sand.u32 1, %s2378_s24   ;;  %s1363_s10 = sshll.u32 %s2292_s20, 4 }
 0x167   : > { %s927_s15 = scalar_lea.vmem %s2271_s12, %s1363_s10 [#allocation4]   ;;  %s929_s16 = scalar_lea.vmem %s2286_s18, %s1363_s10  }
 0x168   : > { %p1331_p3 = scmp.le.s32.totalorder %s2302_s13, 0 }
 0x169   : > { %s2013_s17 = smov (!%p1331_p3), %s929_s16   ;;  %s2017_s19 = smov (!%p1331_p3), %s927_s15  }
 0x16a   : > { %1196 = sbr.rel (%p1331_p3) target bundleno = 379 (0x17b), region = 225  ;;  %s2021_s21 = smov (!%p1331_p3), 0  }
 0x16b   : > { %s2025_s22 = smov (!%p1331_p3), 0  }
 0x171 LB: >> { %v939_v9 = vld [vmem:[%s2019_s19] sm:$0xff]  ;;  %s941_s24 = sadd.s32 1, %s2023_s21  ;;  %s933_s22 = sadd.s32 1, %s2027_s22   ;;  %s2027_s22 = sphi %s2025_s22, %s933_s22   ;;  %s2023_s21 = sphi %s2021_s21, %s2022_s21   ;;  %s2019_s19 = sphi %s2017_s19, %s946_s19   ;;  %s2015_s17 = sphi %s2013_s17, %s947_s17  }
 0x172   : >> { %940 = vst [vmem:[%s2015_s17] sm:$0xff] %v939_v9  ;;  %p942_p5 = scmp.ge.s32.totalorder %s941_s24, %s2302_s13  ;;  %p932_p8 = scmp.ge.s32.totalorder %s933_s22, %s2302_s13 }
 0x174   : >> { %s2382_s24 = smov (%p942_p5, %s941_s24), 0  ;;  %935 = sbr.rel (!%p932_p8) target bundleno = 369 (0x171), region = 231 }
 0x175   : >> { %s1332_s12 = sshll.u32 %s2382_s24, 3  ;;  %s2022_s21 = smov %s2382_s24  }
 0x176   : >> { %s946_s19 = scalar_lea.vmem %s927_s15, %s1332_s12 [#allocation4]   ;;  %s947_s17 = scalar_lea.vmem %s929_s16, %s1332_s12  }
 0x17b PF: > { %p2369_p10 = scmp.ne.s32.totalorder %s2361_s9, 0 }
 0x17c   : > { %s955_s18 = ssub.s32 (%p2369_p10), 3, %s2169_s30  ;;  %s1365_s20 = sshll.u32 (%p2369_p10), %s2117_s27, 4 }
 0x17d   : > { %953 = sbr.rel (!%p2369_p10) target bundleno = 437 (0x1b5), region = 104  ;;  %p956_p12 = scmp.lt.s32.totalorder (%p2369_p10), %s955_s18, 2 }
 0x17e   : > { %s2317_s29 = scalar_lea.vmem (%p2369_p10), %s2358_s7, %s1365_s20  }
 0x184   : > { %s2384_s18 = smov (!%p956_p12, %s955_s18), 2 }
 0x185   : > { %s1335_s11 = sshll.u32 %s2384_s18, 7 }
 0x186   : > { %p1338_p11 = scmp.eq.s32.totalorder %s1335_s11, 0 }
 0x187   : > { %s2323_s13 = sshrl.u32 (!%p1338_p11), %s2384_s18, 1 }
 0x188   : > { %964 = sbr.rel (%p1338_p11) target bundleno = 437 (0x1b5), region = 108  ;;  %p1339_p4 = scmp.le.s32.totalorder (!%p1338_p11), %s2323_s13, 0 }
 0x18f   : > { %1210 = sbr.rel (%p1339_p4) target bundleno = 416 (0x1a0), region = 236  ;;  %s2029_s27 = smov (!%p1339_p4), %s2317_s29  }
 0x190   : > { %s2033_s9 = smov (!%p1339_p4), %s2274_s14   ;;  %s2037_s30 = smov (!%p1339_p4), 0  }
 0x191   : > { %s2041_s10 = smov (!%p1339_p4), 0  }
 0x196 LB: >> { %v1028_v10 = vld [vmem:[%s2035_s9] sm:$0xff]  ;;  %v1030_v11 = vld [vmem:[%s2035_s9 + $0x8] sm:$0xff]  ;;  %s1032_s15 = sadd.s32 1, %s2039_s30  ;;  %s1022_s10 = sadd.s32 1, %s2043_s10   ;;  %s2043_s10 = sphi %s2041_s10, %s1022_s10   ;;  %s2039_s30 = sphi %s2037_s30, %s2038_s30   ;;  %s2035_s9 = sphi %s2033_s9, %s1037_s9   ;;  %s2031_s27 = sphi %s2029_s27, %s1038_s27  }
 0x197   : >> { %1029 = vst [vmem:[%s2031_s27] sm:$0xff] %v1028_v10  ;;  %1031 = vst [vmem:[%s2031_s27 + $0x8] sm:$0xff] %v1030_v11  ;;  %p1033_p6 = scmp.ge.s32.totalorder %s1032_s15, %s2323_s13  ;;  %p1021_p7 = scmp.ge.s32.totalorder %s1022_s10, %s2323_s13 }
 0x199   : >> { %s2386_s15 = smov (%p1033_p6, %s1032_s15), 0  ;;  %1024 = sbr.rel (!%p1021_p7) target bundleno = 406 (0x196), region = 242 }
 0x19a   : >> { %s1340_s16 = sshll.u32 %s2386_s15, 4  ;;  %s2038_s30 = smov %s2386_s15  }
 0x19b   : >> { %s1037_s9 = scalar_lea.vmem %s2274_s14, %s1340_s16 [#allocation5]   ;;  %s1038_s27 = scalar_lea.vmem %s2317_s29, %s1340_s16  }
 0x1a0 PF: > { %s2333_s17 = sand.u32 1, %s2384_s18   ;;  %s1366_s19 = sshll.u32 %s2323_s13, 4 }
 0x1a1   : > { %s1043_s21 = scalar_lea.vmem %s2274_s14, %s1366_s19 [#allocation5]   ;;  %s1045_s22 = scalar_lea.vmem %s2317_s29, %s1366_s19  }
 0x1a2   : > { %p1345_p9 = scmp.le.s32.totalorder %s2333_s17, 0 }
 0x1a3   : > { %s2045_s24 = smov (!%p1345_p9), %s1045_s22   ;;  %s2049_s12 = smov (!%p1345_p9), %s1043_s21  }
 0x1a4   : > { %1224 = sbr.rel (%p1345_p9) target bundleno = 437 (0x1b5), region = 247  ;;  %s2053_s20 = smov (!%p1345_p9), 0  }
 0x1a5   : > { %s2057_s23 = smov (!%p1345_p9), 0  }
 0x1ab LB: >> { %v1055_v12 = vld [vmem:[%s2051_s12] sm:$0xff]  ;;  %s1057_s18 = sadd.s32 1, %s2055_s20  ;;  %s1049_s23 = sadd.s32 1, %s2059_s23   ;;  %s2059_s23 = sphi %s2057_s23, %s1049_s23   ;;  %s2055_s20 = sphi %s2053_s20, %s2054_s20   ;;  %s2051_s12 = sphi %s2049_s12, %s1062_s12   ;;  %s2047_s24 = sphi %s2045_s24, %s1063_s24  }
 0x1ac   : >> { %1056 = vst [vmem:[%s2047_s24] sm:$0xff] %v1055_v12  ;;  %p1058_p13 = scmp.ge.s32.totalorder %s1057_s18, %s2333_s17  ;;  %p1048_p0 = scmp.ge.s32.totalorder %s1049_s23, %s2333_s17 }
 0x1ae   : >> { %s2388_s18 = smov (%p1058_p13, %s1057_s18), 0  ;;  %1051 = sbr.rel (!%p1048_p0) target bundleno = 427 (0x1ab), region = 253 }
 0x1af   : >> { %s1346_s14 = sshll.u32 %s2388_s18, 3  ;;  %s2054_s20 = smov %s2388_s18  }
 0x1b0   : >> { %s1062_s12 = scalar_lea.vmem %s1043_s21, %s1346_s14 [#allocation5]   ;;  %s1063_s24 = scalar_lea.vmem %s1045_s22, %s1346_s14  }
 0x1b5 PF: > { %p16_p1 = scmp.ge.s32.totalorder %s2119_s28, 4   ;;  %s2370_s24 = smov %s1991_s25 }
 0x1b6   : > { %s2371_s25 = smov %s2127_s8  ;;  %s2372_s26 = smov %s2119_s28 }
 0x1b7   :  { %18 = sbr.rel (!%p16_p1) target bundleno = 2 (0x2), region = 264 }
 0x1be   :  { %1086 = vsyncpa [#allocation3], 1 }
 0x1bf   :  { %1088 = vsyncpa [#allocation3 + $0x1], 1 }

</bundles_post_ra>
